<compile_context>
chip_gen: v6e
topology: v6e:2x2x1
jax: 0.10.0
libtpu: 0.0.40
codegen_flags: <defaults>
</compile_context>

<pallas_src>
import jax
import jax.numpy as jnp
from jax.experimental import pallas as pl
from jax.experimental.pallas import tpu as pltpu


def lp_kernel(x_ref, w_ref, b_ref, o_ref):
    # x_ref: (TB, C, thw)  w_ref: (E, C)  b_ref: (E, 1)  o_ref: (TB, E, thw)
    w = w_ref[...]
    b = b_ref[...]                       # f32, broadcasts over lanes
    for i in range(x_ref.shape[0]):      # TB is static (block shape); usually 1-2
        acc = jnp.dot(w, x_ref[i], preferred_element_type=jnp.float32)
        o_ref[i] = (acc + b).astype(o_ref.dtype)


def _round_down_mult(x, m):
    return (x // m) * m


def _plan_tiles(B, C, E, HW, itemsize, *, vmem_budget_bytes, max_hw_tile):
    """Pick (batch_tile, hw_tile) from a double-buffered VMEM budget."""
    # bytes per HW column per batch element, double-buffered x + o
    col_bytes = 2 * (C + E) * itemsize
    max_cols = max(128, _round_down_mult(vmem_budget_bytes // col_bytes, 128))
    max_cols = min(max_cols, max_hw_tile)

    if HW <= max_cols:
        thw = HW                                        # full-extent block (legal)
        tb = max(1, min(B, vmem_budget_bytes // (col_bytes * max(HW, 1))))
    else:
        thw = max_cols                                  # multiple of 128
        tb = 1

    # v7x has 2 TensorCores: keep >=2 steps on a parallel axis when possible.
    if pl.cdiv(B, tb) * pl.cdiv(HW, thw) < 2:
        if B >= 2:
            tb = (B + 1) // 2
        elif HW >= 256:
            thw = max(128, _round_down_mult(HW // 2 + 127, 128))
    return tb, thw


def lp_forward(x, weight, bias, *, compute_dtype=None,
               vmem_budget_bytes=24 << 20, max_hw_tile=32768):
    """x: (B, C, H, W); weight: (E, C); bias: (E,). Returns (B, E, H, W)."""
    B, C, H, W = x.shape
    E = weight.shape[0]
    HW = H * W
    out_dtype = x.dtype

    if compute_dtype is not None:
        # caller-side (HBM-level) cast to halve read traffic; accum stays f32
        x = x.astype(compute_dtype)
        weight = weight.astype(compute_dtype)

    itemsize = max(jnp.dtype(x.dtype).itemsize, jnp.dtype(out_dtype).itemsize)
    tb, thw = _plan_tiles(B, C, E, HW, itemsize,
                          vmem_budget_bytes=vmem_budget_bytes,
                          max_hw_tile=max_hw_tile)

    x3d = x.reshape(B, C, HW)                 # free reshape (NCHW-contiguous)
    b2d = bias.reshape(E, 1).astype(jnp.float32)

    out3d = pl.pallas_call(
        lp_kernel,
        out_shape=jax.ShapeDtypeStruct((B, E, HW), out_dtype),
        grid_spec=pltpu.PrefetchScalarGridSpec(
            num_scalar_prefetch=0,
            grid=(pl.cdiv(B, tb), pl.cdiv(HW, thw)),
            in_specs=[
                pl.BlockSpec((tb, C, thw), lambda b, t: (b, 0, t)),
                pl.BlockSpec((E, C), lambda b, t: (0, 0)),   # weight resident
                pl.BlockSpec((E, 1), lambda b, t: (0, 0)),   # bias resident
            ],
            out_specs=pl.BlockSpec((tb, E, thw), lambda b, t: (b, 0, t)),
        ),
        compiler_params=pltpu.CompilerParams(
            dimension_semantics=("parallel", "parallel"),
            # 32 MiB is plenty (working set <= ~24 MiB) and leaves headroom on
            # v7x's 64 MiB physical VMEM; fine on v5e/v6e (128 MiB physical).
            vmem_limit_bytes=32 << 20,
        ),
    )(x3d, weight, b2d)

    return out3d.reshape(B, E, H, W)          # free reshape


if __name__ == "__main__":
    # small shapes consistent with the module: LP(input_dim=32, embed_dim=16)
    B, C, H, W = 2, 32, 16, 16
    E = 16

    key = jax.random.PRNGKey(0)
    kx, kw, kb = jax.random.split(key, 3)
    x = jax.random.normal(kx, (B, C, H, W), dtype=jnp.float32)
    # deterministic parameter init (synthetic; mimics nn.Linear shapes)
    weight = jax.random.normal(kw, (E, C), dtype=jnp.float32) * 0.02
    bias = jax.random.normal(kb, (E,), dtype=jnp.float32) * 0.02

    out = lp_forward(x, weight, bias)
    out = jax.block_until_ready(out)

    # reference check against plain-JAX equivalent of the PyTorch forward
    ref = jnp.einsum("bchw,ec->behw", x, weight) + bias[None, :, None, None]
    assert out.shape == (B, E, H, W)
    assert jnp.allclose(out, ref, atol=1e-5, rtol=1e-5)

    print("KERNEL_OK")
</pallas_src>

<mosaic_0001>
module attributes {stable_mosaic.version = 11 : i64} {
  func.func @lp_kernel(%arg0: i32, %arg1: i32, %arg2: memref<1x32x256xf32, #tpu.memory_space<vmem>>, %arg3: memref<16x32xf32, #tpu.memory_space<vmem>>, %arg4: memref<16x1xf32, #tpu.memory_space<vmem>>, %arg5: memref<1x16x256xf32, #tpu.memory_space<vmem>>) attributes {dimension_semantics = [#tpu.dimension_semantics<parallel>, #tpu.dimension_semantics<parallel>], iteration_bounds = array<i64: 2, 1>, scalar_prefetch = 0 : i64, scratch_operands = 0 : i64, tpu.core_type = #tpu.core_type<tc>, window_params = [{transform_indices = @transform_0, window_bounds = array<i64: 1, 32, 256>}, {pipeline_mode = #tpu.pipeline_mode<synchronous>, transform_indices = @transform_1, window_bounds = array<i64: 16, 32>}, {pipeline_mode = #tpu.pipeline_mode<synchronous>, transform_indices = @transform_2, window_bounds = array<i64: 16, 1>}, {transform_indices = @transform_3, window_bounds = array<i64: 1, 16, 256>}]} {
    %c0 = arith.constant 0 : index
    %c0_0 = arith.constant 0 : index
    %0 = vector.load %arg3[%c0, %c0_0] : memref<16x32xf32, #tpu.memory_space<vmem>>, vector<16x32xf32>
    %c0_1 = arith.constant 0 : index
    %c0_2 = arith.constant 0 : index
    %1 = vector.load %arg4[%c0_1, %c0_2] : memref<16x1xf32, #tpu.memory_space<vmem>>, vector<16x1xf32>
    %c0_3 = arith.constant 0 : index
    %c0_4 = arith.constant 0 : index
    %c0_5 = arith.constant 0 : index
    %2 = vector.load %arg2[%c0_3, %c0_4, %c0_5] : memref<1x32x256xf32, #tpu.memory_space<vmem>>, vector<1x32x256xf32>
    %3 = vector.shape_cast %2 : vector<1x32x256xf32> to vector<32x256xf32>
    %cst = arith.constant dense<0.000000e+00> : vector<16x256xf32>
    %4 = tpu.matmul %0, %3, %cst {dimension_numbers = #tpu.dot_dimension_numbers<[1], [0], [0], [1], [0, 0, 1, 1], [], []>} : vector<16x32xf32>, vector<32x256xf32>, vector<16x256xf32> -> vector<16x256xf32>
    %5 = vector.broadcast %1 : vector<16x1xf32> to vector<16x256xf32>
    %6 = arith.addf %4, %5 : vector<16x256xf32>
    %c0_6 = arith.constant 0 : index
    %c0_7 = arith.constant 0 : index
    %c0_8 = arith.constant 0 : index
    %7 = vector.load %arg5[%c0_6, %c0_7, %c0_8] : memref<1x16x256xf32, #tpu.memory_space<vmem>>, vector<1x16x256xf32>
    %8 = vector.shape_cast %7 : vector<1x16x256xf32> to vector<16x256xf32>
    %9 = vector.shape_cast %6 : vector<16x256xf32> to vector<1x16x256xf32>
    tpu.vector_store %arg5[%c0_6, %c0_7, %c0_8], %9 {strides = array<i32>} : memref<1x16x256xf32, #tpu.memory_space<vmem>>, vector<1x16x256xf32>,
    return
  }
  func.func @transform_0(%arg0: i32, %arg1: i32) -> (i32, i32, i32) {
    %c0_i32 = arith.constant 0 : i32
    %c0_i32_0 = arith.constant 0 : i32
    return %arg0, %c0_i32, %arg1 : i32, i32, i32
  }
  func.func @transform_1(%arg0: i32, %arg1: i32) -> (i32, i32) {
    %c0_i32 = arith.constant 0 : i32
    %c0_i32_0 = arith.constant 0 : i32
    %c0_i32_1 = arith.constant 0 : i32
    return %c0_i32, %c0_i32_0 : i32, i32
  }
  func.func @transform_2(%arg0: i32, %arg1: i32) -> (i32, i32) {
    %c0_i32 = arith.constant 0 : i32
    %c0_i32_0 = arith.constant 0 : i32
    %c0_i32_1 = arith.constant 0 : i32
    return %c0_i32, %c0_i32_0 : i32, i32
  }
  func.func @transform_3(%arg0: i32, %arg1: i32) -> (i32, i32, i32) {
    %c0_i32 = arith.constant 0 : i32
    %c0_i32_0 = arith.constant 0 : i32
    return %arg0, %c0_i32, %arg1 : i32, i32, i32
  }
}

</mosaic_0001>

<bundles_post_ra>
// kernel: tpu_custom_call.1
= control target key start
LH: loop header
LB: loop body
LE: loop exit
PB: predicated region body
PF: predicated region fallthrough
CT: control target
= control target key end

     0   :  { %8 = vsyncpa [#allocation3], 0  ;;  %s815_s0 = inlined_call_operand.hbm [shape: f32[2,32,256], index: 0, kind: input, shape index: {}]   ;;  %s816_s1 = inlined_call_operand.vmem [shape: f32[16,32], index: 1, kind: input, shape index: {}]   ;;  %s817_s2 = inlined_call_operand.vmem [shape: f32[16,1], index: 2, kind: input, shape index: {}]   ;;  %s818_s3 = inlined_call_operand.hbm [shape: f32[2,16,256], index: 3, kind: output, shape index: {}]  }
   0x1   :  { %10 = vsyncpa [#allocation3 + $0x1], 0 }
   0x2   :  { %11 = vsyncpa [#allocation4], 0 }
   0x3   :  { %13 = vsyncpa [#allocation4 + $0x1], 0  ;;  %s656_s12 = smov 0   ;;  %s658_s13 = smov 0  }
   0x4   :  { %s660_s14 = smov 0   ;;  %s662_s15 = smov 0  }
   0x5   :  { %s664_s16 = smov 0   ;;  %s666_s17 = smov 0  }
   0x6 LB: > { %s422_s18 = sadd.s32 4294967295, %s626_s17   ;;  %s423_s19 = sadd.s32 4294967294, %s626_s17   ;;  %s626_s17 = sphi %s666_s17, %s19_s17   ;;  %s622_s16 = sphi %s664_s16, %s829_s16   ;;  %s618_s15 = sphi %s662_s15, %s828_s15   ;;  %s614_s14 = sphi %s660_s14, %s827_s14   ;;  %s610_s13 = sphi %s658_s13, %s826_s13   ;;  %s606_s12 = sphi %s656_s12, %s825_s12  }
   0x7   : > { %s31_s20 = sadd.s32 1, %s622_s16  ;;  %s40_s21 = sadd.s32 1, %s614_s14 }
   0x8   : > { %p33_p0 = scmp.ge.s32.totalorder %s31_s20, 2  ;;  %p47_p1 = scmp.ne.s32.totalorder %s614_s14, %s610_s13 }
   0x9   : > { %p48_p2 = scmp.eq.s32.totalorder %s626_s17, 0  ;;  %p53_p3 = scmp.ne.s32.totalorder %s610_s13, %s606_s12 }
   0xa   : > { %s831_s20 = smov (%p33_p0, %s31_s20), 0  ;;  %p54_p5 = scmp.eq.s32.totalorder %s422_s18, 0 }
   0xb   : > { %p697_p4 = por %p48_p2, %p47_p1  ;;  %s35_s23 = ssub.s32 %s622_s16, %s831_s20 }
   0xc   : > { %p121_p6 = scmp.eq.s32.totalorder %s422_s18, 1  ;;  %p38_p7 = scmp.eq.s32.totalorder %s35_s23, 0 }
   0xd   : > { %p703_p8 = por %p54_p5, %p53_p3  ;;  %p127_p10 = scmp.eq.s32.totalorder %s423_s19, 1 }
   0xe   : > { %p707_p9 = por %p121_p6, %p47_p1  ;;  %p461_p13 = scmp.lt.s32.totalorder %s626_s17, 2 }
   0xf   : > { %s712_s26 = scalar_select %p38_p7, %s614_s14, %s40_s21  }
  0x10   : > { %p714_p11 = por %p127_p10, %p53_p3  ;;  %s153_s28 = sand.u32 1, %s614_s14  }
  0x11   : > { %s426_s29 = sshll.u32 %s153_s28, 6  ;;  %s439_s30 = sshll.u32 %s622_s16, 10 }
  0x12   : > { %s165_s6 = scalar_lea.hbm %s815_s0, %s439_s30  ;;  %s157_s7 = scalar_lea.vmem [#allocation2], %s426_s29 }
  0x13   : > { %s166_s8 = sshll.u32 %s157_s7, 4  ;;  %p727_p0 = pnand %p461_p13, %p697_p4  ;;  %s167_s8 = int_to_ptr.vmem [resolvable:$true] %s166_s8 }
  0x14   : > { %p429_p1 = scmp.ge.s32.totalorder %s626_s17, 1  ;;  %s154_s10 = scalar_lea.sflag [#allocation3], %s153_s28 }
  0x15   : > { %p520_p2 = pneg %p727_p0  ;;  %s531_s11 = scalar_lea.vmem %s167_s8, 1024 }
  0x16   : > { %p532_p3 = scmp.ne.s32.totalorder %s167_s8, %s531_s11  ;;  %s628_s18 = smov [#allocation2]  }
  0x17   : > { %s536_s19 = sshll.u32 %s628_s18, 4  ;;  %s537_s19 = int_to_ptr.vmem [resolvable:$false] %s536_s19 }
  0x18   : > { %p534_p5 = pnand %p532_p3, %p520_p2  ;;  %s538_s21 = scalar_lea.vmem %s537_s19, 2048 }
  0x19   : > { %p539_p7 = scmp.lt.s32.totalorder %s167_s8, %s537_s19  ;;  %p540_p10 = scmp.lt.s32.totalorder %s538_s21, %s531_s11 }
  0x1a   : > { %p535_p6 = pneg %p534_p5 }
  0x1b   : > { %p541_p12 = por %p540_p10, %p539_p7 }
  0x1d   : > { %p542_p4 = pnand %p541_p12, %p535_p6 }
  0x1f   : > { %545 = shalt.err (!%p542_p4)
}
  0x20   : > { %s629_s22 = smov 256   ;;  %s630_s23 = smov 16  }
  0x21   : > { %456 = dma.hbm_to_vmem [thread:$0]  (!%p727_p0), %s165_s6, 1024, %s167_s8, %s154_s10, %s629_s22, %s629_s22, %s630_s23  }
  0x22   : > { %p174_p13 = scmp.lt.s32.totalorder %s626_s17, 3 }
  0x24   : > { %p175_p2 = pnand %p429_p1, %p174_p13 }
  0x25   : > { %s740_s28 = sand.u32 (!%p175_p2), 1, %s610_s13  }
  0x26   : > { %178 = sbr.rel (%p175_p2) target bundleno = 266 (0x10a), region = 32  ;;  %s430_s29 = sshll.u32 (!%p175_p2), %s740_s28, 6 }
  0x27   : > { %s181_s30 = scalar_lea.sflag (!%p175_p2), [#allocation3], %s740_s28  ;;  %s184_s4 = scalar_lea.vmem (!%p175_p2), [#allocation2], %s430_s29 }
  0x2b   : > { %597 = dma.done.wait (%p703_p8), %s181_s30, 1024  }
  0x2c   : > { %599 = vsyncadd (%p703_p8), %s181_s30, 4294966272  ;;  %v631_v0 = vmov 0.0   ;;  %v632_v1 = vmov 0   ;;  %v220_v2 = vld [vmem:[%s184_s4 + $0x38] sm:$0xff]  ;;  %v219_v3 = vld [vmem:[%s184_s4 + $0x30] sm:$0xff]  ;;  %vm231_vm0 = vcmask 261120  }
  0x2d   : > { %302 = vmatprep.mubr.f32.mxu0 %v631_v0  ;;  %308 = vmatprep.mubr.f32.mxu1 %v631_v0  ;;  %v218_v4 = vld [vmem:[%s184_s4 + $0x28] sm:$0xff]  ;;  %v217_v5 = vld [vmem:[%s184_s4 + $0x20] sm:$0xff]  ;;  %v216_v6 = vld [vmem:[%s184_s4 + $0x18] sm:$0xff]  ;;  %s431_s18 = sshll.u32 %s740_s28, 5  ;;  %s440_s22 = sshll.u32 %s618_s15, 9 }
  0x2e   : > { %517 = vset.pattern.permute.xlu0 %v632_v1  ;;  %262 = vmatprep.subr.mxu0 %v220_v2  ;;  %v215_v7 = vld [vmem:[%s184_s4 + $0x10] sm:$0xff]  ;;  %v214_v8 = vld [vmem:[%s184_s4 + $0x8] sm:$0xff]  ;;  %v213_v9 = vld [vmem:[%s184_s4] sm:$0xff]  ;;  %s206_s19 = scalar_lea.vmem [#allocation5], %s431_s18  ;;  %s767_s30 = scalar_lea.hbm %s818_s3, %s440_s22 }
  0x2f   : > { %441 = vmatprep.subr.mxu1 %v220_v2  ;;  %263 = vmatpush1.msra.mxu0 %v219_v3  ;;  %v209_v10 = vld [vmem:[%s816_s1] sm:$0xff]  ;;  %v210_v11 = vld [vmem:[%s816_s1 + $0x8] sm:$0xff]  ;;  %s335_s21 = sshll.u32 %s206_s19, 4  ;;  %s320_s15 = scalar_lea.sflag [#allocation4], %s740_s28  ;;  %s762_s21 = int_to_ptr.vmem [resolvable:$true] %s335_s21 }
  0x30   : > { %445 = vmatpush1.msra.mxu1 %v219_v3  ;;  %264 = vmatprep.subr.mxu0 %v218_v4  ;;  %v211_v12 = vld [vmem:[%s817_s2] sm:$0xff]  ;;  %v212_v13 = vld [vmem:[%s817_s2 + $0x8] sm:$0xff]  ;;  %s546_s4 = scalar_lea.vmem %s762_s21, 512  ;;  %s633_s24 = smov [#allocation5]  }
  0x31   : > { %442 = vmatprep.subr.mxu1 %v218_v4  ;;  %265 = vmatpush1.msra.mxu0 %v217_v5  ;;  %p547_p8 = scmp.ne.s32.totalorder %s762_s21, %s546_s4  ;;  %s550_s5 = sshll.u32 %s633_s24, 4  ;;  %s551_s5 = int_to_ptr.vmem [resolvable:$false] %s550_s5 }
  0x32   : > { %446 = vmatpush1.msra.mxu1 %v217_v5  ;;  %266 = vmatprep.subr.mxu0 %v216_v6  ;;  %s552_s6 = scalar_lea.vmem %s551_s5, 1024  ;;  %p553_p1 = scmp.lt.s32.totalorder %s762_s21, %s551_s5 }
  0x33   : > { %443 = vmatprep.subr.mxu1 %v216_v6  ;;  %267 = vmatpush1.msra.mxu0 %v215_v7  ;;  %p548_p12 = pnand %p547_p8, %p707_p9  ;;  %p554_p3 = scmp.lt.s32.totalorder %s552_s6, %s546_s4 }
  0x34   : > { %447 = vmatpush1.msra.mxu1 %v215_v7  ;;  %268 = vmatprep.subr.mxu0 %v214_v8 }
  0x35   : > { %444 = vmatprep.subr.mxu1 %v214_v8  ;;  %269 = vmatpush1.msra.mxu0 %v213_v9  ;;  %p549_p0 = pneg %p548_p12  ;;  %p555_p5 = por %p554_p3, %p553_p1 }
  0x36   : > { %448 = vmatpush1.msra.mxu1 %v213_v9  ;;  %432 = vmatmul.mubr.msk.f32.vlgmr.msra.gmra.mxu0 %vm231_vm0, %v209_v10 }
  0x37   : > { %433 = vmatmul.mubr.msk.f32.vlgmr.msra.gmra.mxu1 %vm231_vm0, %v210_v11  ;;  %223 = vperm.xlu0 %517, %v211_v12   ;;  %p556_p6 = pnand %p555_p5, %p549_p0 }
  0x3b   : > { %228 = vperm.xlu0 %517, %v212_v13  }
  0xb2   : > { %v224_v14 = vpop.permute.xlu0 %223 }
  0xb6   : > { %v229_v15 = vpop.permute.xlu0 %228 }
  0xf6   : > { %v304_v16 = vpop.f32.mrf.mxu0 }
  0xf7   : > { %v310_v17 = vpop.f32.mrf.mxu1  ;;  %v305_v18 = vadd.f32 %v304_v16, %v224_v14 }
  0xf8   : > { %v311_v19 = vadd.f32 %v310_v17, %v229_v15  ;;  %v306_v20 = vpop.f32.mrf.mxu0 }
  0xf9   : > { %v312_v21 = vpop.f32.mrf.mxu1  ;;  %315 = vst [vmem:[%s206_s19] sm:$0xff] %v305_v18  ;;  %v307_v22 = vadd.f32 %v306_v20, %v224_v14 }
  0xfa   : > { %317 = vst [vmem:[%s206_s19 + $0x10] sm:$0xff] %v311_v19  ;;  %v313_v23 = vadd.f32 %v312_v21, %v229_v15 }
  0xfb   : > { %316 = vst [vmem:[%s206_s19 + $0x8] sm:$0xff] %v307_v22 }
  0xfc   : > { %318 = vst [vmem:[%s206_s19 + $0x18] sm:$0xff] %v313_v23 }
  0xfd   : > { %559 = shalt.err (!%p556_p6)
}
  0xfe   : > { %s560_s7 = scalar_lea.hbm %s767_s30, 512  ;;  %s564_s10 = scalar_lea.hbm %s818_s3, 1024 }
  0xff   : > { %p561_p7 = scmp.ne.s32.totalorder %s767_s30, %s560_s7  ;;  %p565_p13 = scmp.lt.s32.totalorder %s767_s30, %s818_s3 }
 0x100   : > { %p566_p2 = scmp.lt.s32.totalorder %s564_s10, %s560_s7 }
 0x101   : > { %p562_p10 = pnand %p561_p7, %p707_p9 }
 0x102   : > { %p567_p8 = por %p566_p2, %p565_p13 }
 0x103   : > { %p563_p4 = pneg %p562_p10 }
 0x105   : > { %p568_p12 = pnand %p567_p8, %p563_p4 }
 0x107   : > { %571 = shalt.err (!%p568_p12)
}
 0x108   : > { %s634_s19 = smov 256   ;;  %s635_s22 = smov 16  }
 0x109   : > { %451 = dma.vmem_to_hbm [thread:$0]  (%p707_p9), %s762_s21, 512, %s767_s30, %s320_s15, %s634_s19, %s634_s19, %s635_s22  }
 0x10a PF: > { %s350_s23 = sand.u32 1, %s606_s12   ;;  %p824_p0 = scmp.ge.s32.totalorder %s626_s17, 2 }
 0x10b   : > { %s351_s29 = scalar_lea.sflag [#allocation4], %s350_s23 }
 0x10c   : > { %p458_p1 = pnand %p824_p0, %p714_p11 }
 0x10e   : > { %p459_p3 = pneg %p458_p1 }
 0x110   : > { %601 = dma.done.wait (%p459_p3), %s351_s29, 512  }
 0x111   : > { %603 = vsyncadd (%p459_p3), %s351_s29, 4294966784  ;;  %s19_s17 = sadd.s32 1, %s626_s17   ;;  %s825_s12 = smov %s610_s13 }
 0x112   : > { %p16_p5 = scmp.ge.s32.totalorder %s19_s17, 4   ;;  %s826_s13 = smov %s614_s14 }
 0x113   : > { %s827_s14 = smov %s712_s26  ;;  %s828_s15 = smov %s622_s16 }
 0x114   : > { %s829_s16 = smov %s831_s20  ;;  %18 = sbr.rel (!%p16_p5) target bundleno = 6 (0x6), region = 77 }
 0x119   :  { %356 = vsyncpa [#allocation3], 1 }
 0x11a   :  { %358 = vsyncpa [#allocation3 + $0x1], 1 }
 0x11b   :  { %359 = vsyncpa [#allocation4], 1 }
 0x11c   :  { %361 = vsyncpa [#allocation4 + $0x1], 1 }

</bundles_post_ra>
